<compile_context>
chip_gen: v7x
topology: tpu7x:2x2x1
jax: 0.10.0
libtpu: 0.0.40
codegen_flags: <defaults>
</compile_context>

<pallas_src>
import jax
import jax.numpy as jnp
from jax.experimental import pallas as pl
from jax.experimental.pallas import tpu as pltpu

KERNEL_SIZE = 7
PAD = KERNEL_SIZE // 2


def spatial_attention_kernel(w_ref, b_ref, x_ref, o_ref):
    # w_ref: (2, K) f32 in SMEM   (Conv1d weight, out-channel dim squeezed)
    # b_ref: (1,)   f32 in SMEM   (Conv1d bias)
    # x_ref: (bt, C, L) in VMEM, native dtype (big block is never padded/upcast)
    # o_ref: (bt, C, L) in VMEM
    x = x_ref[...]
    bt, c, l = x.shape

    # Channel pooling (PyTorch dim=1) -> tiny (bt, 1, L) rows; mean accumulates
    # in f32 even for bf16 inputs, max is exact then cast.
    avg = jnp.mean(x, axis=1, keepdims=True, dtype=jnp.float32)
    mx = jnp.max(x, axis=1, keepdims=True).astype(jnp.float32)

    # Conv padding=3: zero-pad ONLY the tiny pooled rows -> (bt, 1, L + 6),
    # materialized once outside the tap loop.
    zpad = jnp.zeros((bt, 1, PAD), jnp.float32)
    avg_p = jnp.concatenate([zpad, avg, zpad], axis=-1)
    mx_p = jnp.concatenate([zpad, mx, zpad], axis=-1)

    # 7-tap, 2-input-channel conv along L, statically unrolled. The lane-shifted
    # slices only touch the (bt, 1, L+6) pooled rows (second-order cost; a
    # pltpu.roll + edge-mask variant would move this onto the idle XLU).
    acc = jnp.full((bt, 1, l), b_ref[0], dtype=jnp.float32)
    for k in range(KERNEL_SIZE):
        acc = (acc
               + w_ref[0, k] * avg_p[:, :, k:k + l]
               + w_ref[1, k] * mx_p[:, :, k:k + l])

    attn = jax.nn.sigmoid(acc).astype(x.dtype)       # (bt, 1, L)
    o_ref[...] = (x * attn).astype(o_ref.dtype)      # full-block native-dtype store


def spatial_attention(x, weight, bias, *, block_budget_bytes=2 * 1024 * 1024):
    """x: (B, C, L); weight: (2, K) f32; bias: (1,) f32 -> (B, C, L).

    `block_budget_bytes` is the per-copy block budget; the pipeline holds
    ~4 copies (2x input + 2x output double buffers) plus in-kernel temporaries,
    which is what vmem_limit_bytes below is sized against.
    """
    B, C, L = x.shape
    itemsize = x.dtype.itemsize

    # VMEM bytes of one (1, C, L) slab including sublane/lane padding.
    padded_slab = (-(-C // 8) * 8) * (-(-L // 128) * 128) * itemsize

    # Pack as many batch elements per grid step as fit the per-block budget.
    # bt need not divide B: the ragged tail block is handled by Pallas and is
    # safe because batch elements are independent.
    bt = max(1, min(B, block_budget_bytes // max(1, padded_slab)))

    # Keep >= 2 grid steps when possible: v7x has 2 TensorCores sharing HBM,
    # and >= 2 blocks also lets the DMA pipeline overlap at all.
    if B >= 2 and bt >= B:
        bt = pl.cdiv(B, 2)
    num_blocks = pl.cdiv(B, bt)

    # Explicit scoped-VMEM limit: 2x in + 2x out double buffers plus ~2x of
    # in-kernel temporaries, with headroom; clamped to v7x's 64 MiB physical.
    block_bytes = bt * padded_slab
    vmem_limit = min(max(6 * block_bytes + (1 << 20), 32 << 20), 64 << 20)

    # Purely HBM-bound op: read x once, write the output once.
    nbytes = x.size * itemsize
    cost = pl.CostEstimate(
        flops=4 * B * C * L + 30 * B * L,
        transcendentals=B * L,
        bytes_accessed=2 * nbytes + weight.size * 4 + bias.size * 4,
    )

    return pl.pallas_call(
        spatial_attention_kernel,
        out_shape=jax.ShapeDtypeStruct((B, C, L), x.dtype),
        grid=(num_blocks,),
        in_specs=[
            pl.BlockSpec(memory_space=pltpu.MemorySpace.SMEM),   # conv weight (2, K)
            pl.BlockSpec(memory_space=pltpu.MemorySpace.SMEM),   # conv bias (1,)
            pl.BlockSpec((bt, C, L), lambda g: (g, 0, 0)),       # unpadded x block
        ],
        out_specs=pl.BlockSpec((bt, C, L), lambda g: (g, 0, 0)),
        compiler_params=pltpu.CompilerParams(
            dimension_semantics=("parallel",),
            vmem_limit_bytes=vmem_limit,
        ),
        cost_estimate=cost,
    )(weight, bias, x)


def reference(x, weight, bias):
    """Pure-JAX reference matching the PyTorch forward exactly."""
    avg = jnp.mean(x, axis=1, keepdims=True)
    mx = jnp.max(x, axis=1, keepdims=True)
    comb = jnp.concatenate([avg, mx], axis=1)                    # (B, 2, L)
    out = jax.lax.conv_general_dilated(
        comb, weight[None],                                      # rhs (1, 2, K)
        window_strides=(1,), padding=[(PAD, PAD)],
        dimension_numbers=("NCH", "OIH", "NCH"),
    ) + bias.reshape(1, 1, 1)
    return x * jax.nn.sigmoid(out)


if __name__ == "__main__":
    key = jax.random.PRNGKey(0)
    kx, kw, kb = jax.random.split(key, 3)

    B, C, L = 2, 4, 16
    x = jax.random.normal(kx, (B, C, L), dtype=jnp.float32)

    # Deterministic Conv1d(2, 1, 7) parameters (PyTorch-style uniform bound).
    fan_in = 2 * KERNEL_SIZE
    bound = 1.0 / jnp.sqrt(jnp.float32(fan_in))
    weight = jax.random.uniform(kw, (2, KERNEL_SIZE), jnp.float32, -bound, bound)
    bias = jax.random.uniform(kb, (1,), jnp.float32, -bound, bound)

    out = spatial_attention(x, weight, bias)
    out = jax.block_until_ready(out)

    ref = reference(x, weight, bias)
    assert out.shape == (B, C, L)
    assert jnp.allclose(out, ref, atol=1e-5, rtol=1e-5), "mismatch vs reference"

    print("KERNEL_OK")
</pallas_src>

<mosaic_0001>
module attributes {stable_mosaic.version = 11 : i64} {
  func.func @spatial_attention_kernel(%arg0: i32, %arg1: memref<2x7xf32, #tpu.memory_space<smem>>, %arg2: memref<1xf32, #tpu.memory_space<smem>>, %arg3: memref<1x4x16xf32, #tpu.memory_space<vmem>>, %arg4: memref<1x4x16xf32, #tpu.memory_space<vmem>>) attributes {dimension_semantics = [#tpu.dimension_semantics<parallel>], iteration_bounds = array<i64: 2>, scalar_prefetch = 0 : i64, scratch_operands = 0 : i64, tpu.core_type = #tpu.core_type<tc>, window_params = [{transform_indices = @transform_0, window_bounds = array<i64: 2, 7>}, {transform_indices = @transform_1, window_bounds = array<i64: 1>}, {transform_indices = @transform_2, window_bounds = array<i64: 1, 4, 16>}, {transform_indices = @transform_3, window_bounds = array<i64: 1, 4, 16>}]} {
    %c0 = arith.constant 0 : index
    %c0_0 = arith.constant 0 : index
    %c0_1 = arith.constant 0 : index
    %0 = vector.load %arg3[%c0, %c0_0, %c0_1] : memref<1x4x16xf32, #tpu.memory_space<vmem>>, vector<1x4x16xf32>
    %cst = arith.constant dense<0.000000e+00> : vector<1x16xf32>
    %1 = vector.multi_reduction <add>, %0, %cst [1] : vector<1x4x16xf32> to vector<1x16xf32>
    %2 = vector.shape_cast %1 : vector<1x16xf32> to vector<1x1x16xf32>
    %cst_2 = arith.constant 4.000000e+00 : f32
    %3 = vector.broadcast %cst_2 : f32 to vector<1x1x16xf32>
    %4 = arith.divf %2, %3 : vector<1x1x16xf32>
    %cst_3 = arith.constant dense<0xFF800000> : vector<1x16xf32>
    %5 = vector.multi_reduction <maximumf>, %0, %cst_3 [1] : vector<1x4x16xf32> to vector<1x16xf32>
    %6 = vector.shape_cast %5 : vector<1x16xf32> to vector<1x1x16xf32>
    %cst_4 = arith.constant 0.000000e+00 : f32
    %7 = vector.broadcast %cst_4 : f32 to vector<1x1x3xf32>
    %8 = tpu.concatenate %7, %4, %7 in 2 : vector<1x1x3xf32>, vector<1x1x16xf32>, vector<1x1x3xf32> -> vector<1x1x22xf32>
    %9 = tpu.concatenate %7, %6, %7 in 2 : vector<1x1x3xf32>, vector<1x1x16xf32>, vector<1x1x3xf32> -> vector<1x1x22xf32>
    %c0_5 = arith.constant 0 : index
    %10 = memref.load %arg2[%c0_5] : memref<1xf32, #tpu.memory_space<smem>>
    %11 = vector.broadcast %10 : f32 to vector<1x1x16xf32>
    %c0_6 = arith.constant 0 : index
    %c0_7 = arith.constant 0 : index
    %12 = memref.load %arg1[%c0_6, %c0_7] : memref<2x7xf32, #tpu.memory_space<smem>>
    %13 = vector.extract_strided_slice %8 {offsets = [0, 0, 0], sizes = [1, 1, 16], strides = [1, 1, 1]} : vector<1x1x22xf32> to vector<1x1x16xf32>
    %14 = vector.broadcast %12 : f32 to vector<1x1x16xf32>
    %15 = arith.mulf %14, %13 : vector<1x1x16xf32>
    %16 = arith.addf %11, %15 : vector<1x1x16xf32>
    %c1 = arith.constant 1 : index
    %c0_8 = arith.constant 0 : index
    %17 = memref.load %arg1[%c1, %c0_8] : memref<2x7xf32, #tpu.memory_space<smem>>
    %18 = vector.extract_strided_slice %9 {offsets = [0, 0, 0], sizes = [1, 1, 16], strides = [1, 1, 1]} : vector<1x1x22xf32> to vector<1x1x16xf32>
    %19 = vector.broadcast %17 : f32 to vector<1x1x16xf32>
    %20 = arith.mulf %19, %18 : vector<1x1x16xf32>
    %21 = arith.addf %16, %20 : vector<1x1x16xf32>
    %c0_9 = arith.constant 0 : index
    %c1_10 = arith.constant 1 : index
    %22 = memref.load %arg1[%c0_9, %c1_10] : memref<2x7xf32, #tpu.memory_space<smem>>
    %23 = vector.extract_strided_slice %8 {offsets = [0, 0, 1], sizes = [1, 1, 16], strides = [1, 1, 1]} : vector<1x1x22xf32> to vector<1x1x16xf32>
    %24 = vector.broadcast %22 : f32 to vector<1x1x16xf32>
    %25 = arith.mulf %24, %23 : vector<1x1x16xf32>
    %26 = arith.addf %21, %25 : vector<1x1x16xf32>
    %c1_11 = arith.constant 1 : index
    %c1_12 = arith.constant 1 : index
    %27 = memref.load %arg1[%c1_11, %c1_12] : memref<2x7xf32, #tpu.memory_space<smem>>
    %28 = vector.extract_strided_slice %9 {offsets = [0, 0, 1], sizes = [1, 1, 16], strides = [1, 1, 1]} : vector<1x1x22xf32> to vector<1x1x16xf32>
    %29 = vector.broadcast %27 : f32 to vector<1x1x16xf32>
    %30 = arith.mulf %29, %28 : vector<1x1x16xf32>
    %31 = arith.addf %26, %30 : vector<1x1x16xf32>
    %c0_13 = arith.constant 0 : index
    %c2 = arith.constant 2 : index
    %32 = memref.load %arg1[%c0_13, %c2] : memref<2x7xf32, #tpu.memory_space<smem>>
    %33 = vector.extract_strided_slice %8 {offsets = [0, 0, 2], sizes = [1, 1, 16], strides = [1, 1, 1]} : vector<1x1x22xf32> to vector<1x1x16xf32>
    %34 = vector.broadcast %32 : f32 to vector<1x1x16xf32>
    %35 = arith.mulf %34, %33 : vector<1x1x16xf32>
    %36 = arith.addf %31, %35 : vector<1x1x16xf32>
    %c1_14 = arith.constant 1 : index
    %c2_15 = arith.constant 2 : index
    %37 = memref.load %arg1[%c1_14, %c2_15] : memref<2x7xf32, #tpu.memory_space<smem>>
    %38 = vector.extract_strided_slice %9 {offsets = [0, 0, 2], sizes = [1, 1, 16], strides = [1, 1, 1]} : vector<1x1x22xf32> to vector<1x1x16xf32>
    %39 = vector.broadcast %37 : f32 to vector<1x1x16xf32>
    %40 = arith.mulf %39, %38 : vector<1x1x16xf32>
    %41 = arith.addf %36, %40 : vector<1x1x16xf32>
    %c0_16 = arith.constant 0 : index
    %c3 = arith.constant 3 : index
    %42 = memref.load %arg1[%c0_16, %c3] : memref<2x7xf32, #tpu.memory_space<smem>>
    %43 = vector.extract_strided_slice %8 {offsets = [0, 0, 3], sizes = [1, 1, 16], strides = [1, 1, 1]} : vector<1x1x22xf32> to vector<1x1x16xf32>
    %44 = vector.broadcast %42 : f32 to vector<1x1x16xf32>
    %45 = arith.mulf %44, %43 : vector<1x1x16xf32>
    %46 = arith.addf %41, %45 : vector<1x1x16xf32>
    %c1_17 = arith.constant 1 : index
    %c3_18 = arith.constant 3 : index
    %47 = memref.load %arg1[%c1_17, %c3_18] : memref<2x7xf32, #tpu.memory_space<smem>>
    %48 = vector.extract_strided_slice %9 {offsets = [0, 0, 3], sizes = [1, 1, 16], strides = [1, 1, 1]} : vector<1x1x22xf32> to vector<1x1x16xf32>
    %49 = vector.broadcast %47 : f32 to vector<1x1x16xf32>
    %50 = arith.mulf %49, %48 : vector<1x1x16xf32>
    %51 = arith.addf %46, %50 : vector<1x1x16xf32>
    %c0_19 = arith.constant 0 : index
    %c4 = arith.constant 4 : index
    %52 = memref.load %arg1[%c0_19, %c4] : memref<2x7xf32, #tpu.memory_space<smem>>
    %53 = vector.extract_strided_slice %8 {offsets = [0, 0, 4], sizes = [1, 1, 16], strides = [1, 1, 1]} : vector<1x1x22xf32> to vector<1x1x16xf32>
    %54 = vector.broadcast %52 : f32 to vector<1x1x16xf32>
    %55 = arith.mulf %54, %53 : vector<1x1x16xf32>
    %56 = arith.addf %51, %55 : vector<1x1x16xf32>
    %c1_20 = arith.constant 1 : index
    %c4_21 = arith.constant 4 : index
    %57 = memref.load %arg1[%c1_20, %c4_21] : memref<2x7xf32, #tpu.memory_space<smem>>
    %58 = vector.extract_strided_slice %9 {offsets = [0, 0, 4], sizes = [1, 1, 16], strides = [1, 1, 1]} : vector<1x1x22xf32> to vector<1x1x16xf32>
    %59 = vector.broadcast %57 : f32 to vector<1x1x16xf32>
    %60 = arith.mulf %59, %58 : vector<1x1x16xf32>
    %61 = arith.addf %56, %60 : vector<1x1x16xf32>
    %c0_22 = arith.constant 0 : index
    %c5 = arith.constant 5 : index
    %62 = memref.load %arg1[%c0_22, %c5] : memref<2x7xf32, #tpu.memory_space<smem>>
    %63 = vector.extract_strided_slice %8 {offsets = [0, 0, 5], sizes = [1, 1, 16], strides = [1, 1, 1]} : vector<1x1x22xf32> to vector<1x1x16xf32>
    %64 = vector.broadcast %62 : f32 to vector<1x1x16xf32>
    %65 = arith.mulf %64, %63 : vector<1x1x16xf32>
    %66 = arith.addf %61, %65 : vector<1x1x16xf32>
    %c1_23 = arith.constant 1 : index
    %c5_24 = arith.constant 5 : index
    %67 = memref.load %arg1[%c1_23, %c5_24] : memref<2x7xf32, #tpu.memory_space<smem>>
    %68 = vector.extract_strided_slice %9 {offsets = [0, 0, 5], sizes = [1, 1, 16], strides = [1, 1, 1]} : vector<1x1x22xf32> to vector<1x1x16xf32>
    %69 = vector.broadcast %67 : f32 to vector<1x1x16xf32>
    %70 = arith.mulf %69, %68 : vector<1x1x16xf32>
    %71 = arith.addf %66, %70 : vector<1x1x16xf32>
    %c0_25 = arith.constant 0 : index
    %c6 = arith.constant 6 : index
    %72 = memref.load %arg1[%c0_25, %c6] : memref<2x7xf32, #tpu.memory_space<smem>>
    %73 = vector.extract_strided_slice %8 {offsets = [0, 0, 6], sizes = [1, 1, 16], strides = [1, 1, 1]} : vector<1x1x22xf32> to vector<1x1x16xf32>
    %74 = vector.broadcast %72 : f32 to vector<1x1x16xf32>
    %75 = arith.mulf %74, %73 : vector<1x1x16xf32>
    %76 = arith.addf %71, %75 : vector<1x1x16xf32>
    %c1_26 = arith.constant 1 : index
    %c6_27 = arith.constant 6 : index
    %77 = memref.load %arg1[%c1_26, %c6_27] : memref<2x7xf32, #tpu.memory_space<smem>>
    %78 = vector.extract_strided_slice %9 {offsets = [0, 0, 6], sizes = [1, 1, 16], strides = [1, 1, 1]} : vector<1x1x22xf32> to vector<1x1x16xf32>
    %79 = vector.broadcast %77 : f32 to vector<1x1x16xf32>
    %80 = arith.mulf %79, %78 : vector<1x1x16xf32>
    %81 = arith.addf %76, %80 : vector<1x1x16xf32>
    %82 = arith.negf %81 : vector<1x1x16xf32>
    %83 = math.exp %82 : vector<1x1x16xf32>
    %cst_28 = arith.constant 1.000000e+00 : f32
    %84 = vector.broadcast %cst_28 : f32 to vector<1x1x16xf32>
    %85 = arith.addf %84, %83 : vector<1x1x16xf32>
    %86 = arith.divf %84, %85 : vector<1x1x16xf32>
    %87 = vector.broadcast %86 : vector<1x1x16xf32> to vector<1x4x16xf32>
    %88 = arith.mulf %0, %87 : vector<1x4x16xf32>
    %c0_29 = arith.constant 0 : index
    %c0_30 = arith.constant 0 : index
    %c0_31 = arith.constant 0 : index
    %89 = vector.load %arg4[%c0_29, %c0_30, %c0_31] : memref<1x4x16xf32, #tpu.memory_space<vmem>>, vector<1x4x16xf32>
    tpu.vector_store %arg4[%c0_29, %c0_30, %c0_31], %88 {strides = array<i32>} : memref<1x4x16xf32, #tpu.memory_space<vmem>>, vector<1x4x16xf32>,
    return
  }
  func.func @transform_0(%arg0: i32) -> (i32, i32) {
    %c0_i32 = arith.constant 0 : i32
    %c0_i32_0 = arith.constant 0 : i32
    %c0_i32_1 = arith.constant 0 : i32
    return %c0_i32, %c0_i32_0 : i32, i32
  }
  func.func @transform_1(%arg0: i32) -> i32 {
    %c0_i32 = arith.constant 0 : i32
    %c0_i32_0 = arith.constant 0 : i32
    return %c0_i32 : i32
  }
  func.func @transform_2(%arg0: i32) -> (i32, i32, i32) {
    %c0_i32 = arith.constant 0 : i32
    %c0_i32_0 = arith.constant 0 : i32
    %c0_i32_1 = arith.constant 0 : i32
    return %arg0, %c0_i32, %c0_i32_0 : i32, i32, i32
  }
  func.func @transform_3(%arg0: i32) -> (i32, i32, i32) {
    %c0_i32 = arith.constant 0 : i32
    %c0_i32_0 = arith.constant 0 : i32
    %c0_i32_1 = arith.constant 0 : i32
    return %arg0, %c0_i32, %c0_i32_0 : i32, i32, i32
  }
}

</mosaic_0001>

<bundles_post_ra>
// kernel: tpu_custom_call.1
= control target key start
LH: loop header
LB: loop body
LE: loop exit
PB: predicated region body
PF: predicated region fallthrough
CT: control target
= control target key end

     0   :  { %s919_s0 = inlined_call_operand.vmem [shape: f32[2,7], index: 0, kind: input, shape index: {}]   ;;  %s920_s1 = inlined_call_operand.<no memory space> [shape: f32[1], index: 1, kind: input, shape index: {}]   ;;  %s921_s2 = inlined_call_operand.hbm [shape: f32[2,4,16], index: 2, kind: input, shape index: {}]   ;;  %s922_s3 = inlined_call_operand.hbm [shape: f32[2,4,16], index: 3, kind: output, shape index: {}]  }
   0x1   :  { %8 = sst [smem:[#allocation2]] %s920_s1 }
   0x2   :  { %9 = vsyncpa [#allocation6], 0 }
   0x3   :  { %10 = vsyncpa [#allocation4], 0 }
   0x4   :  { %12 = vsyncpa [#allocation4 + $0x1], 0 }
   0x5   :  { %13 = vsyncpa [#allocation5], 0 }
   0x6   :  { %15 = vsyncpa [#allocation5 + $0x1], 0  ;;  %s693_s14 = smov 0   ;;  %s695_s15 = smov 0  }
   0x7   :  { %s697_s16 = smov 0   ;;  %s699_s17 = smov 0  }
   0x8 LB: > { %s714_s1 = sadd.s32 4294967295, %s658_s17   ;;  %s447_s18 = sadd.s32 4294967294, %s658_s17   ;;  %s658_s17 = sphi %s699_s17, %s943_s17   ;;  %s654_s16 = sphi %s697_s16, %s942_s16   ;;  %s650_s15 = sphi %s695_s15, %s941_s15   ;;  %s646_s14 = sphi %s693_s14, %s940_s14  }
   0x9   : > { %p83_p0 = scmp.ne.s32.totalorder %s650_s15, %s646_s14  ;;  %p923_p1 = scmp.eq.s32.totalorder %s714_s1, 0 }
   0xa   : > { %p113_p3 = scmp.eq.s32.totalorder %s447_s18, 1  ;;  %p448_p5 = scmp.ge.s32.totalorder %s658_s17, 1 }
   0xb   : > { %p723_p4 = por %p923_p1, %p83_p0  ;;  %p120_p7 = scmp.lt.s32.totalorder %s658_s17, 3 }
   0xc   : > { %p728_p6 = por %p113_p3, %p83_p0  ;;  %s133_s23 = sshll.u32 %s919_s0, 4  ;;  %s134_s23 = int_to_ptr.vmem [resolvable:$true] %s133_s23 }
   0xd   : > { %s926_s19 = scalar_select %p723_p4, 1, 0 }
   0xe   : > { %s927_s20 = scalar_select %p728_p6, 1, 0 }
   0xf   : > { %p736_p8 = pnand %p448_p5, %p120_p7  ;;  %s744_s25 = sadd.s32 1, %s658_s17  }
  0x10   : > { %s67_s27 = ssub.s32 %s658_s17, %s744_s25  ;;  %s70_s29 = sadd.s32 1, %s654_s16 }
  0x11   : > { %p483_p10 = pneg %p736_p8  ;;  %p754_p12 = scmp.eq.s32.totalorder %s67_s27, 0 }
  0x12   : > { %p77_p13 = scmp.ne.s32.totalorder %s654_s16, %s650_s15  ;;  %s543_s30 = scalar_lea.vmem %s134_s23, 32 }
  0x13   : > { %p748_p11 = pnand %p483_p10, %p923_p1  ;;  %p544_p0 = scmp.ne.s32.totalorder %s134_s23, %s543_s30 }
  0x14   : > { %p551_p9 = scmp.lt.s32.totalorder %s134_s23, %s134_s23  ;;  %p552_p2 = scmp.lt.s32.totalorder %s543_s30, %s543_s30 }
  0x15   : > { %p545_p3 = pneg %p748_p11 }
  0x16   : > { %p553_p10 = por %p552_p2, %p551_p9 }
  0x17   : > { %p546_p5 = pnand %p545_p3, %p544_p0 }
  0x19   : > { %p547_p7 = pneg %p546_p5 }
  0x1b   : > { %p554_p1 = pnand %p553_p10, %p547_p7 }
  0x1d   : > { %557 = shalt.err (!%p554_p1)
}
  0x1e   : > { %s660_s4 = smov [#allocation3]   ;;  %p78_p2 = scmp.eq.s32.totalorder %s658_s17, 0 }
  0x1f   : > { %486 = dma.vmem_to_smem (!%p748_p11), %s134_s23, 32, %s660_s4, [#allocation6]  }
  0x20   : > { %s768_s5 = scalar_select %p754_p12, %s654_s16, %s70_s29  }
  0x21   : > { %p931_p1 = scmp.eq.s32.totalorder %s714_s1, 1  ;;  %p496_p0 = scmp.lt.s32.totalorder %s658_s17, 2 }
  0x22   : > { %s147_s7 = sand.u32 1, %s654_s16   ;;  %p79_p3 = por %p78_p2, %p77_p13 }
  0x23   : > { %p776_p9 = por %p931_p1, %p77_p13  ;;  %s451_s8 = sshll.u32 %s147_s7, 2 }
  0x24   : > { %s452_s9 = sshll.u32 %s658_s17, 6  ;;  %s151_s13 = scalar_lea.vmem [#allocation7], %s451_s8 }
  0x25   : > { %s932_s6 = scalar_select %p776_p9, 1, 0 }
  0x26   : > { %s789_s12 = scalar_lea.hbm %s921_s2, %s452_s9  ;;  %s158_s18 = sshll.u32 %s151_s13, 4  ;;  %s795_s18 = int_to_ptr.vmem [resolvable:$true] %s158_s18 }
  0x27   : > { %p791_p11 = pnand %p496_p0, %p79_p3  ;;  %s148_s22 = scalar_lea.sflag [#allocation4], %s147_s7 }
  0x28   : > { %s558_s23 = scalar_lea.hbm %s789_s12, 64  ;;  %s563_s28 = scalar_lea.hbm %s921_s2, 128 }
  0x29   : > { %p559_p12 = scmp.ne.s32.totalorder %s789_s12, %s558_s23  ;;  %p560_p13 = pneg %p791_p11 }
  0x2a   : > { %p564_p10 = scmp.lt.u32.totalorder %s789_s12, %s921_s2  ;;  %p565_p2 = scmp.lt.u32.totalorder %s563_s28, %s558_s23 }
  0x2b   : > { %p561_p5 = pnand %p560_p13, %p559_p12  ;;  %p567_p0 = scmp.lt.u32.totalorder %s558_s23, %s789_s12 }
  0x2c   : > { %p566_p1 = por %p565_p2, %p564_p10 }
  0x2d   : > { %p562_p7 = pneg %p561_p5 }
  0x2e   : > { %p568_p3 = por %p567_p0, %p566_p1 }
  0x30   : > { %p569_p6 = pnand %p568_p3, %p562_p7 }
  0x32   : > { %572 = shalt.err (!%p569_p6)
}
  0x33   : > { %s573_s4 = scalar_lea.vmem %s795_s18, 64  ;;  %s661_s7 = smov [#allocation7]  }
  0x34   : > { %p574_p12 = scmp.ne.s32.totalorder %s795_s18, %s573_s4  ;;  %s578_s8 = sshll.u32 %s661_s7, 4  ;;  %s579_s8 = int_to_ptr.vmem [resolvable:$false] %s578_s8 }
  0x35   : > { %s580_s9 = scalar_lea.vmem %s579_s8, 128  ;;  %p581_p4 = scmp.lt.s32.totalorder %s795_s18, %s579_s8 }
  0x36   : > { %p576_p5 = pnand %p574_p12, %p560_p13  ;;  %p582_p10 = scmp.lt.s32.totalorder %s580_s9, %s573_s4 }
  0x38   : > { %p577_p9 = pneg %p576_p5  ;;  %p583_p2 = por %p582_p10, %p581_p4 }
  0x3a   : > { %p584_p1 = pnand %p583_p2, %p577_p9 }
  0x3c   : > { %587 = shalt.err (!%p584_p1)
}
  0x3d   : > { %490 = dma.hbm_to_vmem [thread:$0]  (!%p791_p11), %s789_s12, 64, %s795_s18, %s148_s22  }
  0x3e   : > { %167 = sbr.rel (%p736_p8) target bundleno = 396 (0x18c), region = 32  ;;  %p934_p6 = scmp.eq.s32.totalorder (!%p736_p8), %s714_s1, 0 }
  0x45   : > { %633 = dma.done.wait (%p934_p6), [#allocation6], 32   ;;  %p935_p13 = pmov %p934_p6 }
  0x46   : > { %s829_s10 = sand.u32 1, %s650_s15   ;;  %p936_p4 = scmp.ne.s32.totalorder %s926_s19, 0 }
  0x47   : > { %635 = vsyncadd (%p935_p13), [#allocation6], 4294967264  ;;  %s455_s11 = sshll.u32 %s829_s10, 2  ;;  %s174_s13 = scalar_lea.sflag [#allocation4], %s829_s10 }
  0x48   : > { %s177_s12 = scalar_lea.vmem [#allocation7], %s455_s11 }
  0x49   : > { %637 = dma.done.wait (%p936_p4), %s174_s13, 64  }
  0x4a   : > { %639 = vsyncadd (%p936_p4), %s174_s13, 4294967232 }
  0x4b   : > { %182 = sfence }
  0x4c   : > { %v839_v0 = vld [vmem:[%s177_s12] sm:$0xf]  ;;  %vm202_vm0 = vcmask 125952   ;;  %s662_s19 = smov 3   ;;  %s460_s24 = sld [smem:[#allocation3 + $0x2]]  ;;  %vm223_vm1 = vcmask 23552  }
  0x4d   : > { %v203_v1 = vsel %vm202_vm0, %v839_v0, 0.0  ;;  %v212_v2 = vsel %vm202_vm0, %v839_v0, -inf  ;;  %s458_s18 = sld [smem:[#allocation3 + $0x1]]  ;;  %s235_s21 = sld [smem:[#allocation3]]  ;;  %vm225_vm2 = vcmask 154624  }
  0x4e   : > { %v204_v3 = vrot.slane %v203_v1, 4  ;;  %v213_v4 = vrot.slane %v212_v2, 4  ;;  %s462_s22 = sld [smem:[#allocation3 + $0x3]]  ;;  %s459_s23 = sld [smem:[#allocation3 + $0x81]] }
  0x4f   : > { %s845_s26 = sld [smem:[#allocation2]]  ;;  %s849_s28 = sld [smem:[#allocation3 + $0x4]] }
  0x50   : > { %v205_v5 = vadd.f32 %v204_v3, %v203_v1  ;;  %v214_v6 = vmax.f32 %v212_v2, %v213_v4  ;;  %s847_s27 = sld [smem:[#allocation3 + $0x80]]  ;;  %s851_s29 = sld [smem:[#allocation3 + $0x82]] }
  0x51   : > { %s855_s30 = sld [smem:[#allocation3 + $0x5]]  ;;  %s857_s4 = sld [smem:[#allocation3 + $0x83]] }
  0x52   : > { %v206_v7 = vrot.slane %v205_v5, 2  ;;  %v215_v8 = vrot.slane %v214_v6, 2  ;;  %v260_v17 = vstv %s460_s24  ;;  %s663_s7 = smov 126   ;;  %s664_s8 = smov 127  }
  0x53   : > { %v244_v18 = vstv %s458_s18  ;;  %v236_v20 = vstv %s235_s21  ;;  %s468_s9 = sld [smem:[#allocation3 + $0x6]]  ;;  %s465_s13 = sld [smem:[#allocation3 + $0x84]] }
  0x54   : > { %v207_v9 = vadd.f32 %v206_v7, %v205_v5  ;;  %v216_v10 = vmax.f32 %v214_v6, %v215_v8  ;;  %v276_v25 = vstv %s462_s22  ;;  %v252_v26 = vstv %s459_s23  ;;  %s665_s12 = smov 125   ;;  %s666_s24 = smov 124  }
  0x55   : > { %v234_v29 = vstv %s845_s26  ;;  %v292_v34 = vstv %s849_s28  ;;  %s469_s18 = sld [smem:[#allocation3 + $0x86]]  ;;  %s667_s21 = smov 123  }
  0x56   : > { %v208_v11 = vrot.slane %v207_v9, 1  ;;  %v217_v13 = vrot.slane %v216_v10, 1  ;;  %v240_v30 = vstv %s847_s27  ;;  %v268_v35 = vstv %s851_s29  ;;  %s668_s22 = smov 122   ;;  %s472_s23 = sshll.u32 %s714_s1, 6 }
  0x57   : > { %v308_v41 = vstv %s855_s30  ;;  %v284_v42 = vstv %s857_s4  ;;  %s200_s26 = scalar_lea.vmem [#allocation8], %s455_s11  ;;  %s874_s30 = scalar_lea.hbm %s922_s3, %s472_s23 }
  0x58   : > { %v209_v12 = vadd.f32 %v208_v11, %v207_v9  ;;  %v218_v15 = vmax.f32 %v216_v10, %v217_v13  ;;  %s365_s27 = sshll.u32 %s200_s26, 4  ;;  %s352_s4 = scalar_lea.sflag [#allocation5], %s829_s10  ;;  %s876_s27 = int_to_ptr.vmem [resolvable:$true] %s365_s27 }
  0x59   : > { %v324_v45 = vstv %s468_s9  ;;  %v300_v46 = vstv %s465_s13  ;;  %s588_s1 = scalar_lea.vmem %s876_s27, 64  ;;  %p937_p9 = scmp.ne.s32.totalorder %s932_s6, 0 }
  0x5a   : > { %v211_v14 = vmul.f32 0.25, %v209_v12  ;;  %p589_p8 = scmp.ne.s32.totalorder %s876_s27, %s588_s1  ;;  %s669_s11 = smov [#allocation8]  }
  0x5b   : > { %v332_v51 = vstv %s469_s18 }
  0x5c   : > { %220 = vrot.lane.b32.xlu0 %v211_v14, %s662_s19  ;;  %p590_p11 = pnand %p589_p8, %p937_p9 }
  0x5e   : > { %p591_p7 = pneg %p590_p11 }
  0x60   : > { %228 = vrot.lane.b32.xlu0 %v218_v15, %s662_s19  ;;  %s467_s19 = sld [smem:[#allocation3 + $0x85]] }
  0x66   : > { %v316_v49 = vstv %s467_s19 }
  0xce   : > { %v221_v16 = vpop.permute.xlu0 %220 }
  0xcf   : > { %v224_v19 = vsel %vm223_vm1, 0.0, %v221_v16 }
  0xd0   : > { %v226_v21 = vsel %vm225_vm2, %v224_v19, 0.0 }
  0xd1   : > { %v261_v22 = vmul.f32 %v260_v17, %v226_v21  ;;  %v245_v23 = vmul.f32 %v244_v18, %v226_v21  ;;  %v237_v27 = vmul.f32 %v236_v20, %v226_v21  ;;  %v277_v32 = vmul.f32 %v276_v25, %v226_v21 }
  0xd2   : > { %v229_v24 = vpop.permute.xlu0 %228  ;;  %v293_v39 = vmul.f32 %v292_v34, %v226_v21  ;;  %v309_v43 = vmul.f32 %v308_v41, %v226_v21  ;;  %v325_v47 = vmul.f32 %v324_v45, %v226_v21  ;;  %v345_v17 = vlaneseq }
  0xd3   : > { %v231_v28 = vsel %vm223_vm1, 0.0, %v229_v24  ;;  %263 = vrot.lane.b32.xlu0 %v261_v22, %s663_s7  ;;  %247 = vrot.lane.b32.xlu1 %v245_v23, %s664_s8  ;;  %v238_v36 = vadd.f32 %v237_v27, %v234_v29 }
  0xd4   : > { %v232_v31 = vsel %vm225_vm2, %v231_v28, 0.0  ;;  %v346_v18 = vshrl.u32 %v345_v17, 7 }
  0xd5   : > { %v253_v33 = vmul.f32 %v252_v26, %v232_v31  ;;  %v241_v37 = vmul.f32 %v240_v30, %v232_v31  ;;  %v269_v40 = vmul.f32 %v268_v35, %v232_v31  ;;  %v285_v44 = vmul.f32 %v284_v42, %v232_v31 }
  0xd6   : > { %v301_v48 = vmul.f32 %v300_v46, %v232_v31  ;;  %v317_v50 = vmul.f32 %v316_v49, %v232_v31  ;;  %v333_v52 = vmul.f32 %v332_v51, %v232_v31  ;;  %v347_v19 = vsub.s32 0, %v346_v18 }
  0xd7   : > { %279 = vrot.lane.b32.xlu0 %v277_v32, %s665_s12  ;;  %255 = vrot.lane.b32.xlu1 %v253_v33, %s664_s8  ;;  %v242_v38 = vadd.f32 %v241_v37, %v238_v36 }
  0xdb   : > { %295 = vrot.lane.b32.xlu0 %v293_v39, %s666_s24  ;;  %271 = vrot.lane.b32.xlu1 %v269_v40, %s663_s7  ;;  %s592_s7 = sshll.u32 %s669_s11, 4  ;;  %s593_s7 = int_to_ptr.vmem [resolvable:$false] %s592_s7 }
  0xdc   : > { %s594_s8 = scalar_lea.vmem %s593_s7, 128  ;;  %p595_p0 = scmp.lt.s32.totalorder %s876_s27, %s593_s7 }
  0xdd   : > { %p596_p3 = scmp.lt.s32.totalorder %s594_s8, %s588_s1 }
  0xdf   : > { %311 = vrot.lane.b32.xlu0 %v309_v43, %s667_s21  ;;  %287 = vrot.lane.b32.xlu1 %v285_v44, %s665_s12  ;;  %p597_p12 = por %p596_p3, %p595_p0 }
  0xe1   : > { %p598_p5 = pnand %p597_p12, %p591_p7 }
  0xe3   : > { %327 = vrot.lane.b32.xlu0 %v325_v47, %s668_s22  ;;  %303 = vrot.lane.b32.xlu1 %v301_v48, %s666_s24 }
  0xe7   : > { %319 = vrot.lane.b32.xlu1 %v317_v50, %s667_s21 }
  0xeb   : > { %335 = vrot.lane.b32.xlu1 %v333_v52, %s668_s22 }
 0x145   : > { %v248_v53 = vpop.permute.xlu1 %247  ;;  %v264_v54 = vpop.permute.xlu0 %263 }
 0x146   : > { %v250_v55 = vadd.f32 %v248_v53, %v242_v38 }
 0x149   : > { %v256_v56 = vpop.permute.xlu1 %255  ;;  %v280_v57 = vpop.permute.xlu0 %279 }
 0x14a   : > { %v258_v58 = vadd.f32 %v256_v56, %v250_v55 }
 0x14c   : > { %v266_v59 = vadd.f32 %v264_v54, %v258_v58 }
 0x14d   : > { %v272_v60 = vpop.permute.xlu1 %271  ;;  %v296_v62 = vpop.permute.xlu0 %295 }
 0x14e   : > { %v274_v61 = vadd.f32 %v272_v60, %v266_v59 }
 0x150   : > { %v282_v63 = vadd.f32 %v280_v57, %v274_v61 }
 0x151   : > { %v288_v1 = vpop.permute.xlu1 %287  ;;  %v312_v4 = vpop.permute.xlu0 %311 }
 0x152   : > { %v290_v2 = vadd.f32 %v288_v1, %v282_v63 }
 0x154   : > { %v298_v3 = vadd.f32 %v296_v62, %v290_v2 }
 0x155   : > { %v304_v5 = vpop.permute.xlu1 %303  ;;  %v328_v10 = vpop.permute.xlu0 %327 }
 0x156   : > { %v306_v6 = vadd.f32 %v304_v5, %v298_v3 }
 0x158   : > { %v314_v7 = vadd.f32 %v312_v4, %v306_v6 }
 0x159   : > { %v320_v8 = vpop.permute.xlu1 %319 }
 0x15a   : > { %v322_v9 = vadd.f32 %v320_v8, %v314_v7 }
 0x15c   : > { %v330_v11 = vadd.f32 %v328_v10, %v322_v9 }
 0x15d   : > { %v336_v12 = vpop.permute.xlu1 %335 }
 0x15e   : > { %v338_v13 = vadd.f32 %v336_v12, %v330_v11 }
 0x160   : > { %v470_v14 = vmul.f32 -1.442695, %v338_v13 }
 0x162   : > { %539 = vpow2.f32 %v470_v14 }
 0x16c   : > { %v540_v15 = vpop.eup %539 }
 0x16d   : > { %v342_v16 = vadd.f32 1.0, %v540_v15 }
 0x16f   : > { %541 = vrcp.f32 %v342_v16 }
 0x179   : > { %v542_v20 = vpop.eup %541 }
 0x17a   : > { %v348_v21 = vrot.slane %v542_v20, %v347_v19 }
 0x17c   : > { %v349_v22 = vmul.f32 %v348_v21, %v839_v0 }
 0x17e   : > { %350 = vst.msk [vmem:[%s200_s26] sm:$0xf] %vm202_vm0, %v349_v22 }
 0x17f   : > { %601 = shalt.err (!%p598_p5)
}
 0x180   : > { %s602_s10 = scalar_lea.hbm %s874_s30, 64  ;;  %s606_s12 = scalar_lea.hbm %s922_s3, 128 }
 0x181   : > { %p603_p10 = scmp.ne.s32.totalorder %s874_s30, %s602_s10  ;;  %p607_p6 = scmp.lt.u32.totalorder %s874_s30, %s922_s3 }
 0x182   : > { %p608_p13 = scmp.lt.u32.totalorder %s606_s12, %s602_s10  ;;  %p610_p8 = scmp.lt.u32.totalorder %s602_s10, %s874_s30 }
 0x183   : > { %p604_p2 = pnand %p603_p10, %p937_p9 }
 0x184   : > { %p609_p4 = por %p608_p13, %p607_p6 }
 0x185   : > { %p605_p1 = pneg %p604_p2 }
 0x186   : > { %p611_p11 = por %p610_p8, %p609_p4 }
 0x188   : > { %p612_p7 = pnand %p611_p11, %p605_p1 }
 0x18a   : > { %615 = shalt.err (!%p612_p7)
}
 0x18b   : > { %481 = dma.vmem_to_hbm [thread:$0]  (%p937_p9), %s876_s27, 64, %s874_s30, %s352_s4  }
 0x18c PF: > { %s377_s18 = sand.u32 1, %s646_s14   ;;  %p938_p0 = scmp.ne.s32.totalorder %s927_s20, 0 }
 0x18d   : > { %p939_p3 = scmp.ge.s32.totalorder %s658_s17, 2  ;;  %s378_s21 = scalar_lea.sflag [#allocation5], %s377_s18 }
 0x18f   : > { %p492_p12 = pnand %p939_p3, %p938_p0 }
 0x191   : > { %641 = dma.done.wait (!%p492_p12), %s378_s21, 64  }
 0x192   : > { %643 = vsyncadd (!%p492_p12), %s378_s21, 4294967232  ;;  %p18_p5 = scmp.ge.s32.totalorder %s744_s25, 4   ;;  %s940_s14 = smov %s650_s15 }
 0x193   : > { %s941_s15 = smov %s654_s16  ;;  %s942_s16 = smov %s768_s5 }
 0x194   : > { %s943_s17 = smov %s744_s25  ;;  %20 = sbr.rel (!%p18_p5) target bundleno = 8 (0x8), region = 82 }
 0x19b   :  { %383 = vsyncpa [#allocation4], 1 }
 0x19c   :  { %385 = vsyncpa [#allocation4 + $0x1], 1 }
 0x19d   :  { %386 = vsyncpa [#allocation5], 1 }
 0x19e   :  { %388 = vsyncpa [#allocation5 + $0x1], 1 }
 0x19f   :  { %389 = vsyncpa [#allocation6], 1 }
 0x1a0   :  { %391 = vsyncpa [#allocation6 + $0x1], 1 }

</bundles_post_ra>
